<compile_context>
chip_gen: v7x
topology: tpu7x:2x2x1
jax: 0.10.0
libtpu: 0.0.40
codegen_flags: <defaults>
</compile_context>

<pallas_src>
import functools

import jax
import jax.numpy as jnp
from jax.experimental import pallas as pl
from jax.experimental.pallas import tpu as pltpu


# ----------------------------------------------------------------------------
# Kernel 1: per-relation feature transform  Y[r] = X_ext @ W_ext[r]
# (slab r == num_rels holds the self-loop weight -> XL = X @ loop_weight)
# ----------------------------------------------------------------------------
def _xw_kernel(x_ref, w_ref, y_ref):
    y_ref[...] = jnp.dot(x_ref[...], w_ref[...],
                         preferred_element_type=jnp.float32)


def _feature_transform(x_ext, w_ext, *, tile_m):
    n, fin_p = x_ext.shape
    r_slabs, _, fp = w_ext.shape
    tm = min(tile_m, n)
    if n % tm:
        raise ValueError(f"N={n} must be divisible by tile_y={tm}")
    return pl.pallas_call(
        _xw_kernel,
        out_shape=jax.ShapeDtypeStruct((r_slabs, n, fp), jnp.float32),
        grid_spec=pltpu.PrefetchScalarGridSpec(
            num_scalar_prefetch=0,
            grid=(r_slabs, n // tm),
            in_specs=[
                pl.BlockSpec((tm, fin_p), lambda r, i: (i, 0)),               # X tile
                pl.BlockSpec((pl.Squeezed(), fin_p, fp), lambda r, i: (r, 0, 0)),  # W_r
            ],
            out_specs=pl.BlockSpec((pl.Squeezed(), tm, fp), lambda r, i: (r, i, 0)),
        ),
        compiler_params=pltpu.CompilerParams(
            dimension_semantics=("parallel", "parallel")),
    )(x_ext, w_ext)


# ----------------------------------------------------------------------------
# Kernel 2: normalized SpMM + relation-sum + self-loop/bias/activation.
# grid = (dst_tiles, num_rels, src_tiles)
# ----------------------------------------------------------------------------
def _rgcn_spmm_kernel(a_ref, y_ref, xl_ref, bias_ref, o_ref, rel_ref, *,
                      fout, self_loop, use_bias, relu_act):
    """
    a_ref   : (tm, tk)  bf16 tile of A_r                (dst x src, 0/1)
    y_ref   : (tk, fp)  f32 tile of Y_r = X @ W_r  (lane `fout` is all-ones)
    xl_ref  : (tm, fp)  f32 tile of X @ loop_weight     (self-loop term)
    bias_ref: (1, fp)   f32 bias (zero-padded)
    o_ref   : (tm, fp)  f32 output block (resident across r,k -> accumulator)
    rel_ref : (tm, fp)  f32 per-relation scratch (msg + degree column)
    """
    r = pl.program_id(1)
    k = pl.program_id(2)
    last_r = pl.num_programs(1) - 1
    last_k = pl.num_programs(2) - 1

    # Initialize the cross-relation accumulator with self-loop + bias at the
    # very first step for this dst tile (overlaps with the A_0 DMA).
    @pl.when(jnp.logical_and(r == 0, k == 0))
    def _():
        init = jnp.zeros_like(o_ref)
        if self_loop:
            init = init + xl_ref[...]
        if use_bias:
            init = init + bias_ref[...]
        o_ref[...] = init

    # Fresh per-relation accumulator at the first src tile of each relation.
    @pl.when(k == 0)
    def _():
        rel_ref[...] = jnp.zeros_like(rel_ref)

    # Single MXU pass: messages AND in-degree (ones column of Y at lane fout).
    a = a_ref[...].astype(jnp.float32)        # bf16 storage, exact 0/1 values
    rel_ref[...] += jnp.dot(a, y_ref[...], preferred_element_type=jnp.float32)

    # After the last src tile: right-normalize by clamped in-degree and fold
    # into the cross-relation sum (division distributes over the k-sum).
    @pl.when(k == last_k)
    def _():
        msg = rel_ref[...]
        deg = jnp.maximum(msg[:, fout:fout + 1], 1.0)   # norm='right', clamp>=1
        # approx=True would move the divide fully onto the EUP at ~1e-3 rel err
        o_ref[...] += msg * pl.reciprocal(deg)

    if relu_act:
        @pl.when(jnp.logical_and(r == last_r, k == last_k))
        def _():
            o_ref[...] = jnp.maximum(o_ref[...], 0.0)


# ----------------------------------------------------------------------------
# Wrapper
# ----------------------------------------------------------------------------
def rel_graph_conv_layer(adj, x, rel_weights, loop_weight, h_bias, *,
                         self_loop=True, use_bias=True, relu_act=True,
                         tile_m=512, tile_k=512, tile_y=512):
    """adj: (R, N, N) 0/1, x: (N, Fin), rel_weights: (R, Fin, Fout),
    loop_weight: (Fin, Fout), h_bias: (Fout,).  Returns (N, Fout) f32.

    Single node type; a heterograph with several dst node types is handled by
    calling this wrapper once per dst node type with that type's relations.
    Dropout p=0.0 -> identity (eval semantics)."""
    R, N, _ = adj.shape
    fin = x.shape[1]
    fout = rel_weights.shape[2]

    # pad out-features to a lane-dense 128 multiple, reserving one extra lane
    # (index `fout`) for the in-degree column.
    fp = ((fout + 1 + 127) // 128) * 128
    # pad the contraction dim of the feature transform (Fin + ones column).
    fin_p = ((fin + 1 + 7) // 8) * 8

    tm = min(tile_m, N)
    tk = min(tile_k, N)
    ty = min(tile_y, N)
    if N % tm or N % tk or N % ty:
        raise ValueError(f"N={N} must be divisible by tiles ({tm},{tk},{ty})")
    if not (tm % 8 == 0 or tm == N) or not (tk % 128 == 0 or tk == N):
        raise ValueError("tiles must respect the (8,128) layout constraint")

    f32 = jnp.float32

    # --- build extended X / W for the hoisted feature transform ------------
    x_ext = jnp.zeros((N, fin_p), f32)
    x_ext = x_ext.at[:, :fin].set(x.astype(f32))
    x_ext = x_ext.at[:, fin].set(1.0)                       # ones column

    w_ext = jnp.zeros((R + 1, fin_p, fp), f32)
    w_ext = w_ext.at[:R, :fin, :fout].set(rel_weights.astype(f32))
    w_ext = w_ext.at[:R, fin, fout].set(1.0)                # -> Y[r][:,fout]=1 (degree)
    w_ext = w_ext.at[R, :fin, :fout].set(loop_weight.astype(f32))

    # Y_all[r] = X @ W_r (padded), Y_all[R] = X @ loop_weight  (Pallas kernel 1)
    y_all = _feature_transform(x_ext, w_ext, tile_m=ty)

    bias_p = jnp.zeros((1, fp), f32).at[0, :fout].set(h_bias.astype(f32))

    # Adjacency streamed in bf16 (0/1 exact) -> half the HBM bytes.
    adj_bf16 = adj.astype(jnp.bfloat16)

    def _a_map(i, r, k):  return (r, i, k)
    def _y_map(i, r, k):  return (r, k, 0)
    def _xl_map(i, r, k): return (R, i, 0)    # self-loop slab of y_all
    def _b_map(i, r, k):  return (0, 0)
    def _o_map(i, r, k):  return (i, 0)

    kernel = functools.partial(_rgcn_spmm_kernel, fout=fout,
                               self_loop=self_loop, use_bias=use_bias,
                               relu_act=relu_act)

    out_p = pl.pallas_call(
        kernel,
        out_shape=jax.ShapeDtypeStruct((N, fp), f32),
        grid_spec=pltpu.PrefetchScalarGridSpec(
            num_scalar_prefetch=0,
            grid=(N // tm, R, N // tk),
            in_specs=[
                pl.BlockSpec((pl.Squeezed(), tm, tk), _a_map),   # A_r tile (bf16)
                pl.BlockSpec((pl.Squeezed(), tk, fp), _y_map),   # Y_r tile
                pl.BlockSpec((pl.Squeezed(), tm, fp), _xl_map),  # X @ loop_weight tile
                pl.BlockSpec((1, fp), _b_map),                   # bias
            ],
            out_specs=pl.BlockSpec((tm, fp), _o_map),
            scratch_shapes=[pltpu.VMEM((tm, fp), jnp.float32)],  # per-relation acc
        ),
        compiler_params=pltpu.CompilerParams(
            # dst tiles parallel (2nd TC on v7x), relation & src are reductions
            dimension_semantics=("parallel", "arbitrary", "arbitrary"),
            vmem_limit_bytes=48 * 1024 * 1024),
    )(adj_bf16, y_all, y_all, bias_p)

    return out_p[:, :fout]


# ----------------------------------------------------------------------------
# Reference + demo
# ----------------------------------------------------------------------------
def _xavier_uniform(key, shape, gain):
    fan_in, fan_out = shape[-2], shape[-1]
    bound = gain * jnp.sqrt(6.0 / (fan_in + fan_out))
    return jax.random.uniform(key, shape, jnp.float32, -bound, bound)


def _reference(adj, x, rel_weights, loop_weight, h_bias):
    acc = jnp.zeros((x.shape[0], rel_weights.shape[2]), jnp.float32)
    for r in range(adj.shape[0]):
        deg = jnp.maximum(adj[r].sum(axis=1, keepdims=True), 1.0)
        acc = acc + ((adj[r] @ x) / deg) @ rel_weights[r]
    h = acc + x @ loop_weight + h_bias[None, :]
    return jnp.maximum(h, 0.0)


if __name__ == "__main__":
    # Small, deterministic synthetic config (tiles chosen so the grid actually
    # exercises dst/src tiling: 2 x R x 2 grid).
    N = 256          # nodes (single node type)
    IN_FEAT = 32
    OUT_FEAT = 32
    NUM_RELS = 3
    NUM_BASES = 2    # num_bases < num_rels -> WeightBasis path

    key = jax.random.PRNGKey(0)
    k_adj, k_x, k_basis, k_coef, k_loop = jax.random.split(key, 5)

    # dense 0/1 adjacencies per relation (dst x src)
    adj = (jax.random.uniform(k_adj, (NUM_RELS, N, N)) < 0.05).astype(jnp.float32)
    x = jax.random.normal(k_x, (N, IN_FEAT), jnp.float32)

    gain = jnp.sqrt(2.0)  # nn.init.calculate_gain('relu')
    # WeightBasis: bases V_b (Fin, Fout) + coefficients c (R, B); W_r = sum_b c[r,b] V_b
    basis = _xavier_uniform(k_basis, (NUM_BASES, IN_FEAT, OUT_FEAT), gain)
    coeff = _xavier_uniform(k_coef, (NUM_RELS, NUM_BASES), 1.0)
    rel_weights = jnp.einsum("rb,bio->rio", coeff, basis)        # param-setup glue
    loop_weight = _xavier_uniform(k_loop, (IN_FEAT, OUT_FEAT), gain)
    h_bias = jnp.zeros((OUT_FEAT,), jnp.float32)                 # nn.init.zeros_

    out = rel_graph_conv_layer(adj, x, rel_weights, loop_weight, h_bias,
                               self_loop=True, use_bias=True, relu_act=True,
                               tile_m=128, tile_k=128, tile_y=128)
    out = jax.block_until_ready(out)

    ref = _reference(adj, x, rel_weights, loop_weight, h_bias)
    assert out.shape == (N, OUT_FEAT)
    assert jnp.allclose(out, ref, rtol=1e-3, atol=1e-3), "mismatch vs reference"

    # TODO(synk): multiple dst node types (dict outputs) are handled by calling the
    # wrapper once per dst node type with its relations; dropout>0 omitted (p=0.0).
    print("KERNEL_OK")
</pallas_src>

<mosaic_0001>
module attributes {stable_mosaic.version = 11 : i64} {
  func.func @_xw_kernel(%arg0: i32, %arg1: i32, %arg2: memref<128x40xf32, #tpu.memory_space<vmem>>, %arg3: memref<1x40x128xf32, #tpu.memory_space<vmem>>, %arg4: memref<1x128x128xf32, #tpu.memory_space<vmem>>) attributes {dimension_semantics = [#tpu.dimension_semantics<parallel>, #tpu.dimension_semantics<parallel>], iteration_bounds = array<i64: 4, 2>, scalar_prefetch = 0 : i64, scratch_operands = 0 : i64, tpu.core_type = #tpu.core_type<tc>, window_params = [{transform_indices = @transform_0, window_bounds = array<i64: 128, 40>}, {transform_indices = @transform_1, window_bounds = array<i64: 1, 40, 128>}, {transform_indices = @transform_2, window_bounds = array<i64: 1, 128, 128>}]} {
    %c0 = arith.constant 0 : index
    %c0_0 = arith.constant 0 : index
    %0 = vector.load %arg2[%c0, %c0_0] : memref<128x40xf32, #tpu.memory_space<vmem>>, vector<128x40xf32>
    %c0_1 = arith.constant 0 : index
    %c0_2 = arith.constant 0 : index
    %c0_3 = arith.constant 0 : index
    %1 = vector.load %arg3[%c0_1, %c0_2, %c0_3] : memref<1x40x128xf32, #tpu.memory_space<vmem>>, vector<1x40x128xf32>
    %2 = vector.shape_cast %1 : vector<1x40x128xf32> to vector<40x128xf32>
    %cst = arith.constant dense<0.000000e+00> : vector<128x128xf32>
    %3 = tpu.matmul %0, %2, %cst {dimension_numbers = #tpu.dot_dimension_numbers<[1], [0], [0], [1], [0, 0, 1, 1], [], []>} : vector<128x40xf32>, vector<40x128xf32>, vector<128x128xf32> -> vector<128x128xf32>
    %c0_4 = arith.constant 0 : index
    %c0_5 = arith.constant 0 : index
    %c0_6 = arith.constant 0 : index
    %4 = vector.load %arg4[%c0_4, %c0_5, %c0_6] : memref<1x128x128xf32, #tpu.memory_space<vmem>>, vector<1x128x128xf32>
    %5 = vector.shape_cast %4 : vector<1x128x128xf32> to vector<128x128xf32>
    %6 = vector.shape_cast %3 : vector<128x128xf32> to vector<1x128x128xf32>
    tpu.vector_store %arg4[%c0_4, %c0_5, %c0_6], %6 {strides = array<i32>} : memref<1x128x128xf32, #tpu.memory_space<vmem>>, vector<1x128x128xf32>,
    return
  }
  func.func @transform_0(%arg0: i32, %arg1: i32) -> (i32, i32) {
    %c0_i32 = arith.constant 0 : i32
    %c0_i32_0 = arith.constant 0 : i32
    return %arg1, %c0_i32 : i32, i32
  }
  func.func @transform_1(%arg0: i32, %arg1: i32) -> (i32, i32, i32) {
    %c0_i32 = arith.constant 0 : i32
    %c0_i32_0 = arith.constant 0 : i32
    %c0_i32_1 = arith.constant 0 : i32
    return %arg0, %c0_i32, %c0_i32_0 : i32, i32, i32
  }
  func.func @transform_2(%arg0: i32, %arg1: i32) -> (i32, i32, i32) {
    %c0_i32 = arith.constant 0 : i32
    %c0_i32_0 = arith.constant 0 : i32
    return %arg0, %arg1, %c0_i32 : i32, i32, i32
  }
}

</mosaic_0001>

<bundles_post_ra>
// kernel: tpu_custom_call.1
= control target key start
LH: loop header
LB: loop body
LE: loop exit
PB: predicated region body
PF: predicated region fallthrough
CT: control target
= control target key end

     0   :  { %7 = vsyncpa [#allocation3], 0  ;;  %s1005_s0 = inlined_call_operand.vmem [shape: f32[256,40], index: 0, kind: input, shape index: {}]   ;;  %s1006_s1 = inlined_call_operand.vmem [shape: f32[4,40,128], index: 1, kind: input, shape index: {}]   ;;  %s1007_s2 = inlined_call_operand.hbm [shape: f32[4,256,128], index: 2, kind: output, shape index: {}]  }
   0x1   :  { %9 = vsyncpa [#allocation3 + $0x1], 0  ;;  %s802_s9 = smov 0   ;;  %s804_s10 = smov 0  }
   0x2   :  { %s806_s11 = smov 0   ;;  %s808_s12 = smov 0  }
   0x3   :  { %s810_s13 = smov 0   ;;  %s812_s14 = smov 0  }
   0x4   :  { %s814_s15 = smov 0   ;;  %s816_s16 = smov 0  }
   0x5 LB: > { %s514_s17 = sadd.s32 4294967295, %s782_s16   ;;  %s515_s18 = sadd.s32 4294967294, %s782_s16   ;;  %s782_s16 = sphi %s816_s16, %s15_s16   ;;  %s778_s15 = sphi %s814_s15, %s1016_s15   ;;  %s774_s14 = sphi %s812_s14, %s1015_s14   ;;  %s770_s13 = sphi %s810_s13, %s1014_s13   ;;  %s766_s12 = sphi %s808_s12, %s1013_s12   ;;  %s762_s11 = sphi %s806_s11, %s1012_s11   ;;  %s758_s10 = sphi %s804_s10, %s1011_s10   ;;  %s754_s9 = sphi %s802_s9, %s1010_s9  }
   0x6   : > { %s24_s19 = sadd.s32 1, %s774_s14  ;;  %s27_s20 = sadd.s32 1, %s778_s15 }
   0x7   : > { %p25_p0 = scmp.ge.s32.totalorder %s24_s19, 2  ;;  %p98_p1 = scmp.ne.s32.totalorder %s762_s11, %s758_s10 }
   0x8   : > { %p99_p2 = scmp.eq.s32.totalorder %s514_s17, 7  ;;  %p104_p5 = scmp.ne.s32.totalorder %s758_s10, %s754_s9 }
   0x9   : > { %s1018_s19 = smov (%p25_p0, %s24_s19), 0  ;;  %s1020_s20 = smov (!%p25_p0, %s27_s20), %s778_s15 }
   0xa   : > { %s84_s21 = ssub.s32 %s774_s14, %s1018_s19  ;;  %p853_p3 = por %p99_p2, %p98_p1 }
   0xb   : > { %p29_p4 = scmp.ge.s32.totalorder %s1020_s20, 4  ;;  %p105_p6 = scmp.eq.s32.totalorder %s515_s18, 7 }
   0xc   : > { %p518_p7 = scmp.ge.s32.totalorder %s782_s16, 1  ;;  %p140_p9 = scmp.lt.s32.totalorder %s782_s16, 9 }
   0xd   : > { %s1022_s20 = smov (%p29_p4, %s1020_s20), 0  ;;  %p862_p8 = por %p105_p6, %p104_p5 }
   0xe   : > { %s83_s24 = ssub.s32 %s778_s15, %s1022_s20  ;;  %s88_s25 = sadd.s32 1, %s762_s11 }
   0xf   : > { %s85_s26 = sor.u32 %s84_s21, %s83_s24  ;;  %p141_p10 = pnand %p518_p7, %p140_p9 }
  0x10   : > { %p86_p11 = scmp.eq.s32.totalorder %s85_s26, 0  ;;  %p173_p12 = scmp.lt.s32.totalorder (!%p141_p10), %s770_s13, 3  ;;  %vm200_vm0 = vcmask (!%p141_p10), 326656  }
  0x11   : > { %144 = sbr.rel (%p141_p10) target bundleno = 282 (0x11a), region = 28  ;;  %s875_s28 = sshll.u32 (!%p141_p10), %s766_s12, 4 }
  0x12   : > { %s871_s27 = scalar_select %p86_p11, %s762_s11, %s88_s25  }
  0x13   : > { %p168_p13 = scmp.lt.s32.totalorder (!%p141_p10), %s875_s28, 31  ;;  %s164_s12 = sand.u32 (!%p141_p10), 1, %s758_s10  }
  0x14   : > { %s519_s21 = sshll.u32 (!%p141_p10), %s164_s12, 7  ;;  %s541_s24 = sshll.u32 (!%p141_p10), %s770_s13, 5 }
  0x15   : > { %s924_s25 = scalar_lea.vmem (!%p141_p10), [#allocation2], %s519_s21  ;;  %s784_s6 = smov (!%p141_p10), [#allocation2]  }
  0x18   : > { %s174_s29 = scalar_select %p173_p12, %s770_s13, 3 }
  0x19   : > { %s169_s30 = scalar_select %p168_p13, %s875_s28, 31 }
  0x1a   : > { %s614_s3 = smul.u32 40, %s174_s29  ;;  %s423_s13 = sadd.s32 %s541_s24, %s875_s28 }
  0x1b   : > { %s521_s4 = sshll.u32 %s169_s30, 3  ;;  %s542_s26 = sshll.u32 %s423_s13, 7 }
  0x1c   : > { %s177_s7 = scalar_lea.vmem %s1006_s1, %s614_s3  ;;  %s886_s18 = scalar_lea.vmem %s1005_s0, %s521_s4 }
  0x1d   : > { %v195_v0 = vld [vmem:[%s177_s7] sm:$0xff]  ;;  %v196_v1 = vld [vmem:[%s177_s7 + $0x8] sm:$0xff]  ;;  %v197_v2 = vld [vmem:[%s177_s7 + $0x10] sm:$0xff]  ;;  %s426_s29 = sshll.u32 %s924_s25, 4  ;;  %s941_s3 = scalar_lea.hbm %s1007_s2, %s542_s26  ;;  %s945_s29 = int_to_ptr.vmem [resolvable:$true] %s426_s29 }
  0x1e   : > { %v600_v3 = vpack.c.bf16 %v196_v1, %v195_v0  ;;  %v198_v4 = vld [vmem:[%s177_s7 + $0x18] sm:$0xff]  ;;  %v179_v5 = vld [vmem:[%s886_s18] sm:$0xff]  ;;  %v180_v9 = vld [vmem:[%s886_s18 + $0x8] sm:$0xff]  ;;  %s953_s4 = scalar_lea.sflag [#allocation3], %s164_s12  ;;  %s688_s5 = scalar_lea.vmem %s945_s29, 2048 }
  0x1f   : > { %v604_v6 = vpack.c.bf16 %v198_v4, %v197_v2  ;;  %576 = vmatprep.mubr.msk.f32.mxu0 %vm200_vm0, %v179_v5  ;;  %v187_v7 = vld [vmem:[%s886_s18 + $0x40] sm:$0xff]  ;;  %v188_v10 = vld [vmem:[%s886_s18 + $0x48] sm:$0xff]  ;;  %v181_v11 = vld [vmem:[%s886_s18 + $0x10] sm:$0xff]  ;;  %p689_p0 = scmp.ne.s32.totalorder %s945_s29, %s688_s5 }
  0x20   : > { %601 = vmatprep.subr.bf16.mxu0 %v600_v3  ;;  %608 = vmatprep.subr.bf16.mxu1 %v600_v3  ;;  %v199_v8 = vld [vmem:[%s177_s7 + $0x20] sm:$0xff]  ;;  %v189_v12 = vld [vmem:[%s886_s18 + $0x50] sm:$0xff]  ;;  %v182_v13 = vld [vmem:[%s886_s18 + $0x18] sm:$0xff]  ;;  %s692_s7 = sshll.u32 %s784_s6, 4  ;;  %s693_s7 = int_to_ptr.vmem [resolvable:$false] %s692_s7 }
  0x21   : > { %603 = vmatpush3.bf16.msra.mxu0 %v600_v3  ;;  %611 = vmatpush3.bf16.msra.mxu1 %v600_v3  ;;  %v190_v14 = vld [vmem:[%s886_s18 + $0x58] sm:$0xff]  ;;  %v183_v15 = vld [vmem:[%s886_s18 + $0x20] sm:$0xff]  ;;  %v184_v17 = vld [vmem:[%s886_s18 + $0x28] sm:$0xff]  ;;  %p690_p1 = pnand %p689_p0, %p853_p3  ;;  %s694_s8 = scalar_lea.vmem %s693_s7, 4096 }
  0x22   : > { %605 = vmatprep.subr.bf16.mxu0 %v604_v6  ;;  %609 = vmatprep.subr.bf16.mxu1 %v604_v6  ;;  %v191_v16 = vld [vmem:[%s886_s18 + $0x60] sm:$0xff]  ;;  %v192_v18 = vld [vmem:[%s886_s18 + $0x68] sm:$0xff]  ;;  %v185_v19 = vld [vmem:[%s886_s18 + $0x30] sm:$0xff]  ;;  %p695_p4 = scmp.lt.s32.totalorder %s945_s29, %s693_s7  ;;  %p696_p5 = scmp.lt.s32.totalorder %s694_s8, %s688_s5 }
  0x23   : > { %588 = vmatprep.mubr.msk.f32.mxu1 %vm200_vm0, %v187_v7  ;;  %v193_v20 = vld [vmem:[%s886_s18 + $0x70] sm:$0xff]  ;;  %v186_v21 = vld [vmem:[%s886_s18 + $0x38] sm:$0xff]  ;;  %p691_p2 = pneg %p690_p1 }
  0x24   : > { %v194_v22 = vld [vmem:[%s886_s18 + $0x78] sm:$0xff]  ;;  %p697_p6 = por %p696_p5, %p695_p4 }
  0x25   : > { %607 = vmatpush3.bf16.msra.mxu0 %v604_v6  ;;  %612 = vmatpush3.bf16.msra.mxu1 %v604_v6 }
  0x26   : > { %574 = vmatprep.subr.mxu0 %v199_v8  ;;  %610 = vmatprep.subr.mxu1 %v199_v8  ;;  %p698_p7 = pnand %p697_p6, %p691_p2 }
  0x29   : > { %575 = vmatpush3.msra.mxu0 %v199_v8  ;;  %613 = vmatpush3.msra.mxu1 %v199_v8 }
  0x2a   : > { %577 = vmatmul.mubr.msk.f32.vlgmr.msra.gmra.mrb[0].mxu0 %vm200_vm0, %v180_v9  ;;  %589 = vmatmul.mubr.msk.f32.vlgmr.msra.gmra.mrb[0].mxu1 %vm200_vm0, %v188_v10 }
  0x2b   : > { %579 = vmatprep.mubr.msk.f32.mxu0 %vm200_vm0, %v181_v11  ;;  %591 = vmatprep.mubr.msk.f32.mxu1 %vm200_vm0, %v189_v12 }
  0x2e   : > { %580 = vmatmul.mubr.msk.f32.gmra.mrb[2].mxu0 %vm200_vm0, %v182_v13  ;;  %592 = vmatmul.mubr.msk.f32.gmra.mrb[2].mxu1 %vm200_vm0, %v190_v14 }
  0x2f   : > { %582 = vmatprep.mubr.msk.f32.mxu0 %vm200_vm0, %v183_v15  ;;  %594 = vmatprep.mubr.msk.f32.mxu1 %vm200_vm0, %v191_v16 }
  0x32   : > { %583 = vmatmul.mubr.msk.f32.gmra.mrb[4].mxu0 %vm200_vm0, %v184_v17  ;;  %595 = vmatmul.mubr.msk.f32.gmra.mrb[4].mxu1 %vm200_vm0, %v192_v18 }
  0x33   : > { %585 = vmatprep.mubr.msk.f32.mxu0 %vm200_vm0, %v185_v19  ;;  %597 = vmatprep.mubr.msk.f32.mxu1 %vm200_vm0, %v193_v20 }
  0x36   : > { %586 = vmatmul.mubr.msk.f32.gmra.mrb[6].mxu0 %vm200_vm0, %v186_v21  ;;  %598 = vmatmul.mubr.msk.f32.gmra.mrb[6].mxu1 %vm200_vm0, %v194_v22 }
  0xfd   : > { %v578_v23 = vpop.f32.mrb[0].mxu0  ;;  %v590_v24 = vpop.f32.mrb[0].mxu1 }
  0xfe   : > { %395 = vst [vmem:[%s924_s25 + $0x8] sm:$0xff] %v578_v23  ;;  %403 = vst [vmem:[%s924_s25 + $0x48] sm:$0xff] %v590_v24  ;;  %v315_v25 = vpop.f32.mrb[1].mxu0  ;;  %v355_v26 = vpop.f32.mrb[1].mxu1 }
  0xff   : > { %394 = vst [vmem:[%s924_s25] sm:$0xff] %v315_v25  ;;  %402 = vst [vmem:[%s924_s25 + $0x40] sm:$0xff] %v355_v26 }
 0x101   : > { %v581_v27 = vpop.f32.mrb[2].mxu0  ;;  %v593_v28 = vpop.f32.mrb[2].mxu1 }
 0x102   : > { %397 = vst [vmem:[%s924_s25 + $0x18] sm:$0xff] %v581_v27  ;;  %405 = vst [vmem:[%s924_s25 + $0x58] sm:$0xff] %v593_v28  ;;  %v325_v29 = vpop.f32.mrb[3].mxu0  ;;  %v365_v30 = vpop.f32.mrb[3].mxu1 }
 0x103   : > { %396 = vst [vmem:[%s924_s25 + $0x10] sm:$0xff] %v325_v29  ;;  %404 = vst [vmem:[%s924_s25 + $0x50] sm:$0xff] %v365_v30 }
 0x105   : > { %v584_v31 = vpop.f32.mrb[4].mxu0  ;;  %v596_v32 = vpop.f32.mrb[4].mxu1 }
 0x106   : > { %399 = vst [vmem:[%s924_s25 + $0x28] sm:$0xff] %v584_v31  ;;  %407 = vst [vmem:[%s924_s25 + $0x68] sm:$0xff] %v596_v32  ;;  %v335_v33 = vpop.f32.mrb[5].mxu0  ;;  %v375_v34 = vpop.f32.mrb[5].mxu1 }
 0x107   : > { %398 = vst [vmem:[%s924_s25 + $0x20] sm:$0xff] %v335_v33  ;;  %406 = vst [vmem:[%s924_s25 + $0x60] sm:$0xff] %v375_v34 }
 0x109   : > { %v587_v35 = vpop.f32.mrb[6].mxu0  ;;  %v599_v36 = vpop.f32.mrb[6].mxu1 }
 0x10a   : > { %401 = vst [vmem:[%s924_s25 + $0x38] sm:$0xff] %v587_v35  ;;  %409 = vst [vmem:[%s924_s25 + $0x78] sm:$0xff] %v599_v36  ;;  %v345_v37 = vpop.f32.mrb[7].mxu0  ;;  %v385_v38 = vpop.f32.mrb[7].mxu1 }
 0x10b   : > { %400 = vst [vmem:[%s924_s25 + $0x30] sm:$0xff] %v345_v37  ;;  %408 = vst [vmem:[%s924_s25 + $0x70] sm:$0xff] %v385_v38 }
 0x10c   : > { %701 = shalt.err (!%p698_p7)
}
 0x10d   : > { %s702_s17 = scalar_lea.hbm %s941_s3, 2048  ;;  %s706_s21 = scalar_lea.hbm %s1007_s2, 16384 }
 0x10e   : > { %p703_p9 = scmp.ne.s32.totalorder %s941_s3, %s702_s17  ;;  %p707_p12 = scmp.lt.u32.totalorder %s941_s3, %s1007_s2 }
 0x10f   : > { %p708_p13 = scmp.lt.u32.totalorder %s706_s21, %s702_s17  ;;  %p710_p1 = scmp.lt.u32.totalorder %s702_s17, %s941_s3 }
 0x110   : > { %p704_p10 = pnand %p703_p9, %p853_p3 }
 0x111   : > { %p709_p0 = por %p708_p13, %p707_p12 }
 0x112   : > { %p705_p11 = pneg %p704_p10 }
 0x113   : > { %p711_p2 = por %p710_p1, %p709_p0 }
 0x115   : > { %p712_p4 = pnand %p711_p2, %p705_p11 }
 0x117   : > { %715 = shalt.err (!%p712_p4)
}
 0x118   : > { %s785_s13 = smov 128   ;;  %s786_s26 = smov 8  }
 0x119   : > { %615 = dma.vmem_to_hbm [thread:$0]  (%p853_p3), %s945_s29, 2048, %s941_s3, %s953_s4, %s785_s13, %s785_s13, %s786_s26  }
 0x11a PF: > { %p621_p5 = scmp.ge.s32.totalorder %s782_s16, 2  ;;  %s441_s28 = sand.u32 1, %s754_s9  }
 0x11b   : > { %s442_s30 = scalar_lea.sflag [#allocation3], %s441_s28 }
 0x11c   : > { %p618_p6 = pnand %p621_p5, %p862_p8 }
 0x11e   : > { %749 = dma.done.wait (!%p618_p6), %s442_s30, 2048  }
 0x11f   : > { %751 = vsyncadd (!%p618_p6), %s442_s30, 4294965248  ;;  %s15_s16 = sadd.s32 1, %s782_s16   ;;  %s1010_s9 = smov %s758_s10 }
 0x120   : > { %p12_p7 = scmp.ge.s32.totalorder %s15_s16, 10   ;;  %s1011_s10 = smov %s762_s11 }
 0x121   : > { %s1012_s11 = smov %s871_s27  ;;  %s1013_s12 = smov %s774_s14 }
 0x122   : > { %s1014_s13 = smov %s778_s15  ;;  %s1015_s14 = smov %s1018_s19 }
 0x123   : > { %s1016_s15 = smov %s1022_s20  ;;  %14 = sbr.rel (!%p12_p7) target bundleno = 5 (0x5), region = 66 }
 0x12a   :  { %447 = vsyncpa [#allocation3], 1 }
 0x12b   :  { %449 = vsyncpa [#allocation3 + $0x1], 1 }

</bundles_post_ra>
